<compile_context>
chip_gen: v7x
topology: tpu7x:2x2x1
jax: 0.10.0
libtpu: 0.0.40
codegen_flags: <defaults>
</compile_context>

<pallas_src>
import functools

import jax
import jax.numpy as jnp
from jax.experimental import pallas as pl
from jax.experimental.pallas import tpu as pltpu


# --------------------------------------------------------------------------
# helpers
# --------------------------------------------------------------------------
def _round_up(x, m):
    return ((x + m - 1) // m) * m


def _choose_conv_tile_h(H, W, cin_p, cout_p, budget=24 * 1024 * 1024):
    """Largest divisor of H whose per-step buffers fit the VMEM budget."""
    def step_bytes(th):
        body = th * (W + 2) * cin_p * 2 * 2          # bf16, double buffered
        halo = 2 * (W + 2) * cin_p * 2 * 2
        wts = 9 * cin_p * cout_p * 2 * 2
        out = th * W * cout_p * 4 * 2                # f32, double buffered
        scratch = (th + 2) * (W + 2) * cin_p * 2
        acc = th * W * cout_p * 4
        return body + halo + wts + out + scratch + acc

    th = H
    while th > 1 and step_bytes(th) > budget:
        nxt = 1
        for d in range(th - 1, 0, -1):
            if H % d == 0:
                nxt = d
                break
        th = nxt
    return th


def _choose_fuse_row_tile(Hmax, Wmax, Cp, ys, scales, budget=24 * 1024 * 1024):
    """Output-row tile for the fused upsample+sum kernel (multiple of 8 or full)."""
    cands = sorted({Hmax} | {d for d in range(8, Hmax, 8) if Hmax % d == 0},
                   reverse=True)

    def step_bytes(tr):
        b = tr * Wmax * Cp * 4 * 2 + 2 * tr * Wmax * Cp * 4
        for y, s in zip(ys, scales):
            _, h, w, _ = y.shape
            if s != 1:
                b += (h * w * Cp * 4 * 2 + tr * h * 4 * 2 + Wmax * w * 4 * 2
                      + tr * Wmax * w * 4 + tr * w * Cp * 4)
            else:
                b += tr * Wmax * Cp * 4 * 2
        return b

    for tr in cands:
        if step_bytes(tr) <= budget:
            return tr
    return cands[-1]


def _interp_matrix(out_size, in_size):
    """Dense 1-D bilinear interpolation matrix, align_corners=True semantics."""
    if out_size == 1:
        src = jnp.zeros((1,), jnp.float32)
    else:
        src = jnp.arange(out_size, dtype=jnp.float32) * (
            (in_size - 1) / (out_size - 1))
    low = jnp.clip(jnp.floor(src).astype(jnp.int32), 0, in_size - 1)
    high = jnp.clip(low + 1, 0, in_size - 1)
    frac = src - low.astype(jnp.float32)
    idx = jnp.arange(out_size)
    M = jnp.zeros((out_size, in_size), jnp.float32)
    M = M.at[idx, low].add(1.0 - frac)
    M = M.at[idx, high].add(frac)
    return M


# --------------------------------------------------------------------------
# 3x3 conv kernel: 9-tap accumulation inside the kernel (no im2col in HBM)
# --------------------------------------------------------------------------
def _conv3x3_kernel(body_ref, halo_ref, w_ref, o_ref, xbuf,
                    *, tile_h, W, cin_p, cout_p):
    # Assemble the (tile_h+2, W+2, cin_p) working window in VMEM:
    #   rows 1..tile_h come from the aligned body tile, rows 0 / tile_h+1 are
    #   the neighbouring rows (or zeros at the image border) from the halo
    #   side-channel. Width / channel padding is already baked in.
    xbuf[1:tile_h + 1, :, :] = body_ref[0]
    xbuf[0, :, :] = halo_ref[0, 0, 0]
    xbuf[tile_h + 1, :, :] = halo_ref[0, 0, 1]

    acc = jnp.zeros((tile_h * W, cout_p), jnp.float32)
    for dy in range(3):
        for dx in range(3):
            xt = xbuf[dy:dy + tile_h, dx:dx + W, :]
            xt = xt.reshape(tile_h * W, cin_p)
            acc = acc + jnp.dot(xt, w_ref[dy * 3 + dx],
                                preferred_element_type=jnp.float32)
    o_ref[0] = acc.reshape(tile_h, W, cout_p).astype(o_ref.dtype)


def conv3x3_pallas(x_nhwc, w_hwio, *, tile_h=None, compute_dtype=jnp.bfloat16):
    """3x3 conv, stride 1, pad 1, no bias.

    x: (N, H, W, Cin) f32, w: (3, 3, Cin, Cout).
    Returns (N, H, W, Cout_padded) f32 with Cout padded up to a multiple of 128
    (lane-dense output); caller slices the padding off at the end.
    """
    N, H, W, Cin = x_nhwc.shape
    Cout = w_hwio.shape[-1]
    cin_p = _round_up(Cin, 8)
    cout_p = _round_up(Cout, 128)

    if tile_h is None:
        tile_h = _choose_conv_tile_h(H, W, cin_p, cout_p)
    if H % tile_h != 0:
        raise ValueError(f"H={H} not divisible by tile_h={tile_h}")
    n_tiles = H // tile_h

    # Glue: cast to bf16, pad width by 1 pixel each side and channels to cin_p.
    # (Single ~1.1x copy of x; nothing like the old 9x im2col.)
    x = x_nhwc.astype(compute_dtype)
    x = jnp.pad(x, ((0, 0), (0, 0), (1, 1), (0, cin_p - Cin)))   # (N,H,W+2,cin_p)

    # Halo side-channel: for every row tile, the row just above and just below
    # (zeros at the image border).  Tiny (2 rows per tile).
    zrow = jnp.zeros((N, 1, W + 2, cin_p), compute_dtype)
    top = jnp.concatenate([zrow, x[:, tile_h - 1:H - 1:tile_h]], axis=1)
    bot = jnp.concatenate([x[:, tile_h:H:tile_h], zrow], axis=1)
    halos = jnp.stack([top, bot], axis=2)        # (N, n_tiles, 2, W+2, cin_p)

    w = w_hwio.astype(compute_dtype)
    w = jnp.pad(w, ((0, 0), (0, 0), (0, cin_p - Cin), (0, cout_p - Cout)))
    w = w.reshape(9, cin_p, cout_p)

    kernel = functools.partial(_conv3x3_kernel, tile_h=tile_h, W=W,
                               cin_p=cin_p, cout_p=cout_p)

    flops = 2 * N * H * W * 9 * Cin * Cout
    bytes_accessed = int(x.size * 2 + halos.size * 2 + w.size * 2
                         + N * H * W * cout_p * 4)

    out = pl.pallas_call(
        kernel,
        out_shape=jax.ShapeDtypeStruct((N, H, W, cout_p), jnp.float32),
        grid=(N, n_tiles),
        in_specs=[
            pl.BlockSpec((1, tile_h, W + 2, cin_p), lambda n, i: (n, i, 0, 0)),
            pl.BlockSpec((1, 1, 2, W + 2, cin_p), lambda n, i: (n, i, 0, 0, 0)),
            pl.BlockSpec((9, cin_p, cout_p), lambda n, i: (0, 0, 0)),
        ],
        out_specs=pl.BlockSpec((1, tile_h, W, cout_p),
                               lambda n, i: (n, i, 0, 0)),
        scratch_shapes=[pltpu.VMEM((tile_h + 2, W + 2, cin_p), compute_dtype)],
        compiler_params=pltpu.CompilerParams(
            dimension_semantics=("parallel", "parallel"),
            vmem_limit_bytes=32 * 1024 * 1024),
        cost_estimate=pl.CostEstimate(flops=flops, transcendentals=0,
                                      bytes_accessed=bytes_accessed),
    )(x, halos, w)
    return out


# --------------------------------------------------------------------------
# Fused bilinear-upsample (align_corners=True) + multi-branch sum kernel
# --------------------------------------------------------------------------
def _make_fuse_kernel(has_interp):
    n_br = len(has_interp)

    def kernel(*refs):
        out_ref = refs[-1]
        in_refs = refs[:-1]
        _, tr, Wm, Cp = out_ref.shape
        acc = jnp.zeros((tr, Wm, Cp), jnp.float32)
        idx = 0
        for b in range(n_br):
            if has_interp[b]:
                y_ref, mh_ref, mw_ref = (in_refs[idx], in_refs[idx + 1],
                                         in_refs[idx + 2])
                idx += 3
                y = y_ref[0]                              # (h, w, Cp) f32
                h, w, _ = y.shape
                mh = mh_ref[...]                          # (tr, h)
                mw = mw_ref[...]                          # (Wm, w)
                # separable interp: H first (plain 2-D matmul) ...
                z = jnp.dot(mh, y.reshape(h, w * Cp),
                            preferred_element_type=jnp.float32)
                z = z.reshape(tr, w, Cp)
                # ... then W as a batched matmul over the output-row axis.
                mwb = jnp.broadcast_to(mw[None], (tr, Wm, w))
                contrib = jax.lax.dot_general(
                    mwb, z, (((2,), (1,)), ((0,), (0,))),
                    preferred_element_type=jnp.float32)   # (tr, Wm, Cp)
            else:
                contrib = in_refs[idx][0]                 # (tr, Wm, Cp)
                idx += 1
            acc = acc + contrib
        out_ref[0] = acc.astype(out_ref.dtype)

    return kernel


def fused_upsample_sum_pallas(ys, scales, Hmax, Wmax, *, row_tile=None):
    """Sum of branches, each optionally bilinearly upsampled to (Hmax, Wmax).

    ys: list of (N, h_b, w_b, Cp) f32 (channel-padded to the same Cp).
    """
    N = ys[0].shape[0]
    Cp = ys[0].shape[-1]
    assert all(y.shape[0] == N and y.shape[-1] == Cp for y in ys)
    has_interp = tuple(int(s) != 1 for s in scales)

    if row_tile is None:
        row_tile = _choose_fuse_row_tile(Hmax, Wmax, Cp, ys, scales)
    assert Hmax % row_tile == 0
    n_row_tiles = Hmax // row_tile

    inputs, in_specs = [], []
    for y, s, hi in zip(ys, scales, has_interp):
        _, h, w, _ = y.shape
        if hi:
            assert h * s == Hmax and w * s == Wmax
            # TODO(synk): for very large low-res feature maps, these whole-image
            # blocks would also need row tiling (block-sparse Mh access).
            inputs.append(y)
            in_specs.append(pl.BlockSpec((1, h, w, Cp),
                                         lambda n, r: (n, 0, 0, 0)))
            inputs.append(_interp_matrix(Hmax, h))        # (Hmax, h)
            in_specs.append(pl.BlockSpec((row_tile, h), lambda n, r: (r, 0)))
            inputs.append(_interp_matrix(Wmax, w))        # (Wmax, w)
            in_specs.append(pl.BlockSpec((Wmax, w), lambda n, r: (0, 0)))
        else:
            assert h == Hmax and w == Wmax
            inputs.append(y)
            in_specs.append(pl.BlockSpec((1, row_tile, Wmax, Cp),
                                         lambda n, r: (n, r, 0, 0)))

    out = pl.pallas_call(
        _make_fuse_kernel(has_interp),
        out_shape=jax.ShapeDtypeStruct((N, Hmax, Wmax, Cp), jnp.float32),
        grid=(N, n_row_tiles),
        in_specs=in_specs,
        out_specs=pl.BlockSpec((1, row_tile, Wmax, Cp),
                               lambda n, r: (n, r, 0, 0)),
        compiler_params=pltpu.CompilerParams(
            dimension_semantics=("parallel", "parallel"),
            vmem_limit_bytes=32 * 1024 * 1024),
    )(*inputs)
    return out


# --------------------------------------------------------------------------
# Module
# --------------------------------------------------------------------------
class MultiResolutionFusion:
    """JAX/Pallas port of the PyTorch MultiResolutionFusion module.

    Conv uses bf16 MXU inputs with f32 accumulation; output is f32 NCHW.
    """

    def __init__(self, key, out_feats, *shapes):
        # NOTE: like the PyTorch original, the scale factor is derived from
        # max_h only (assumes proportional H/W scaling across branches).
        _, max_h, max_w = max(shapes, key=lambda x: x[1])
        self.scale_factors = []
        self.weights = []      # each (3, 3, Cin, out_feats), HWIO
        for i, (feat, h, w) in enumerate(shapes):
            if max_h % h != 0:
                raise ValueError(f'max_size not divisible by shape {i}')
            self.scale_factors.append(max_h // h)
            key, sub = jax.random.split(key)
            self.weights.append(
                0.1 * jax.random.normal(sub, (3, 3, feat, out_feats),
                                        jnp.float32))
        self.out_feats = out_feats

    def __call__(self, *xs_nchw):
        ys = []
        for i, x in enumerate(xs_nchw):
            x_nhwc = jnp.transpose(x, (0, 2, 3, 1)).astype(jnp.float32)
            ys.append(conv3x3_pallas(x_nhwc, self.weights[i]))
        hs = [y.shape[1] * s for y, s in zip(ys, self.scale_factors)]
        ws = [y.shape[2] * s for y, s in zip(ys, self.scale_factors)]
        assert len(set(hs)) == 1 and len(set(ws)) == 1, \
            "branch output sizes disagree"
        out = fused_upsample_sum_pallas(ys, self.scale_factors, hs[0], ws[0])
        out = out[..., :self.out_feats]               # drop lane padding
        return jnp.transpose(out, (0, 3, 1, 2))       # back to NCHW


# --------------------------------------------------------------------------
# Pure-JAX reference (same bf16-MXU math) for the correctness check
# --------------------------------------------------------------------------
def reference_forward(module, xs_nchw):
    outs = []
    for i, x in enumerate(xs_nchw):
        x_nhwc = jnp.transpose(x, (0, 2, 3, 1)).astype(jnp.float32)
        y = jax.lax.conv_general_dilated(
            x_nhwc.astype(jnp.bfloat16),
            module.weights[i].astype(jnp.bfloat16),
            window_strides=(1, 1), padding=((1, 1), (1, 1)),
            dimension_numbers=('NHWC', 'HWIO', 'NHWC'),
            preferred_element_type=jnp.float32)
        s = module.scale_factors[i]
        if s != 1:
            _, h, w, _ = y.shape
            Mh = _interp_matrix(h * s, h)
            Mw = _interp_matrix(w * s, w)
            y = jnp.einsum('oh,pw,nhwc->nopc', Mh, Mw, y,
                           precision=jax.lax.Precision.HIGHEST)
        outs.append(y)
    out = functools.reduce(jnp.add, outs)
    return jnp.transpose(out, (0, 3, 1, 2))


# --------------------------------------------------------------------------
if __name__ == "__main__":
    key = jax.random.PRNGKey(0)

    # shapes are (feat, h, w) as in the PyTorch module.
    shapes = ((4, 8, 8), (6, 16, 16))
    out_feats = 8
    batch = 2

    module = MultiResolutionFusion(key, out_feats, *shapes)

    k1, k2 = jax.random.split(jax.random.PRNGKey(1))
    x0 = jax.random.normal(k1, (batch, 4, 8, 8), jnp.float32)     # NCHW
    x1 = jax.random.normal(k2, (batch, 6, 16, 16), jnp.float32)   # NCHW

    out = jax.block_until_ready(module(x0, x1))
    ref = jax.block_until_ready(reference_forward(module, (x0, x1)))

    assert out.shape == (batch, out_feats, 16, 16), out.shape
    err = float(jnp.max(jnp.abs(out - ref)))
    assert jnp.allclose(out, ref, atol=2e-2, rtol=2e-2), err

    # Extra check 1: multi-row-tile conv path (halo handling across tiles).
    kx, kw = jax.random.split(jax.random.PRNGKey(2))
    xt = jax.random.normal(kx, (1, 12, 16, 6), jnp.float32)
    wt = 0.1 * jax.random.normal(kw, (3, 3, 6, 8), jnp.float32)
    yk = conv3x3_pallas(xt, wt, tile_h=4)[..., :8]
    yr = jax.lax.conv_general_dilated(
        xt.astype(jnp.bfloat16), wt.astype(jnp.bfloat16),
        window_strides=(1, 1), padding=((1, 1), (1, 1)),
        dimension_numbers=('NHWC', 'HWIO', 'NHWC'),
        preferred_element_type=jnp.float32)
    yk = jax.block_until_ready(yk)
    err_c = float(jnp.max(jnp.abs(yk - yr)))
    assert jnp.allclose(yk, yr, atol=1e-2, rtol=1e-2), err_c

    # Extra check 2: multi-row-tile fused upsample+sum path.
    ky1, ky2 = jax.random.split(jax.random.PRNGKey(3))
    ylo = jax.random.normal(ky1, (2, 8, 8, 128), jnp.float32)
    yhi = jax.random.normal(ky2, (2, 16, 16, 128), jnp.float32)
    fk = jax.block_until_ready(
        fused_upsample_sum_pallas([ylo, yhi], [2, 1], 16, 16, row_tile=8))
    Mh = _interp_matrix(16, 8)
    Mw = _interp_matrix(16, 8)
    fr = jnp.einsum('oh,pw,nhwc->nopc', Mh, Mw, ylo,
                    precision=jax.lax.Precision.HIGHEST) + yhi
    err_f = float(jnp.max(jnp.abs(fk - fr)))
    assert jnp.allclose(fk, fr, atol=2e-2, rtol=2e-2), err_f

    print("KERNEL_OK")
</pallas_src>

<mosaic_0001>
module attributes {stable_mosaic.version = 11 : i64} {
  func.func @_conv3x3_kernel(%arg0: i32, %arg1: i32, %arg2: memref<1x8x10x8xbf16, #tpu.memory_space<vmem>>, %arg3: memref<1x1x2x10x8xbf16, #tpu.memory_space<vmem>>, %arg4: memref<9x8x128xbf16, #tpu.memory_space<vmem>>, %arg5: memref<1x8x8x128xf32, #tpu.memory_space<vmem>>, %arg6: memref<10x10x8xbf16, #tpu.memory_space<vmem>>) attributes {dimension_semantics = [#tpu.dimension_semantics<parallel>, #tpu.dimension_semantics<parallel>], iteration_bounds = array<i64: 2, 1>, scalar_prefetch = 0 : i64, scratch_operands = 1 : i64, tpu.core_type = #tpu.core_type<tc>, window_params = [{transform_indices = @transform_0, window_bounds = array<i64: 1, 8, 10, 8>}, {transform_indices = @transform_1, window_bounds = array<i64: 1, 1, 2, 10, 8>}, {pipeline_mode = #tpu.pipeline_mode<synchronous>, transform_indices = @transform_2, window_bounds = array<i64: 9, 8, 128>}, {transform_indices = @transform_3, window_bounds = array<i64: 1, 8, 8, 128>}]} {
    %c0 = arith.constant 0 : index
    %c0_0 = arith.constant 0 : index
    %c0_1 = arith.constant 0 : index
    %c0_2 = arith.constant 0 : index
    %0 = vector.load %arg2[%c0, %c0_0, %c0_1, %c0_2] : memref<1x8x10x8xbf16, #tpu.memory_space<vmem>>, vector<1x8x10x8xbf16>
    %1 = vector.shape_cast %0 : vector<1x8x10x8xbf16> to vector<8x10x8xbf16>
    %c1 = arith.constant 1 : index
    %c0_3 = arith.constant 0 : index
    %c0_4 = arith.constant 0 : index
    %2 = vector.load %arg6[%c1, %c0_3, %c0_4] : memref<10x10x8xbf16, #tpu.memory_space<vmem>>, vector<8x10x8xbf16>
    tpu.vector_store %arg6[%c1, %c0_3, %c0_4], %1 {strides = array<i32>} : memref<10x10x8xbf16, #tpu.memory_space<vmem>>, vector<8x10x8xbf16>,
    %c0_5 = arith.constant 0 : index
    %c0_6 = arith.constant 0 : index
    %c0_7 = arith.constant 0 : index
    %c0_8 = arith.constant 0 : index
    %c0_9 = arith.constant 0 : index
    %3 = vector.load %arg3[%c0_5, %c0_6, %c0_7, %c0_8, %c0_9] : memref<1x1x2x10x8xbf16, #tpu.memory_space<vmem>>, vector<1x1x1x10x8xbf16>
    %4 = vector.shape_cast %3 : vector<1x1x1x10x8xbf16> to vector<10x8xbf16>
    %c0_10 = arith.constant 0 : index
    %c0_11 = arith.constant 0 : index
    %c0_12 = arith.constant 0 : index
    %5 = vector.load %arg6[%c0_10, %c0_11, %c0_12] : memref<10x10x8xbf16, #tpu.memory_space<vmem>>, vector<1x10x8xbf16>
    %6 = vector.shape_cast %5 : vector<1x10x8xbf16> to vector<10x8xbf16>
    %7 = vector.shape_cast %4 : vector<10x8xbf16> to vector<1x10x8xbf16>
    tpu.vector_store %arg6[%c0_10, %c0_11, %c0_12], %7 {strides = array<i32>} : memref<10x10x8xbf16, #tpu.memory_space<vmem>>, vector<1x10x8xbf16>,
    %c0_13 = arith.constant 0 : index
    %c0_14 = arith.constant 0 : index
    %c1_15 = arith.constant 1 : index
    %c0_16 = arith.constant 0 : index
    %c0_17 = arith.constant 0 : index
    %8 = vector.load %arg3[%c0_13, %c0_14, %c1_15, %c0_16, %c0_17] : memref<1x1x2x10x8xbf16, #tpu.memory_space<vmem>>, vector<1x1x1x10x8xbf16>
    %9 = vector.shape_cast %8 : vector<1x1x1x10x8xbf16> to vector<10x8xbf16>
    %c9 = arith.constant 9 : index
    %c0_18 = arith.constant 0 : index
    %c0_19 = arith.constant 0 : index
    %10 = vector.load %arg6[%c9, %c0_18, %c0_19] : memref<10x10x8xbf16, #tpu.memory_space<vmem>>, vector<1x10x8xbf16>
    %11 = vector.shape_cast %10 : vector<1x10x8xbf16> to vector<10x8xbf16>
    %12 = vector.shape_cast %9 : vector<10x8xbf16> to vector<1x10x8xbf16>
    tpu.vector_store %arg6[%c9, %c0_18, %c0_19], %12 {strides = array<i32>} : memref<10x10x8xbf16, #tpu.memory_space<vmem>>, vector<1x10x8xbf16>,
    %cst = arith.constant 0.000000e+00 : f32
    %13 = vector.broadcast %cst : f32 to vector<64x128xf32>
    %c0_20 = arith.constant 0 : index
    %c0_21 = arith.constant 0 : index
    %c0_22 = arith.constant 0 : index
    %14 = vector.load %arg6[%c0_20, %c0_21, %c0_22] : memref<10x10x8xbf16, #tpu.memory_space<vmem>>, vector<8x8x8xbf16>
    %15 = vector.shape_cast %14 : vector<8x8x8xbf16> to vector<64x8xbf16>
    %c0_23 = arith.constant 0 : index
    %c0_24 = arith.constant 0 : index
    %c0_25 = arith.constant 0 : index
    %16 = vector.load %arg4[%c0_23, %c0_24, %c0_25] : memref<9x8x128xbf16, #tpu.memory_space<vmem>>, vector<1x8x128xbf16>
    %17 = vector.shape_cast %16 : vector<1x8x128xbf16> to vector<8x128xbf16>
    %cst_26 = arith.constant dense<0.000000e+00> : vector<64x128xf32>
    %18 = tpu.matmul %15, %17, %cst_26 {dimension_numbers = #tpu.dot_dimension_numbers<[1], [0], [0], [1], [0, 0, 1, 1], [], []>} : vector<64x8xbf16>, vector<8x128xbf16>, vector<64x128xf32> -> vector<64x128xf32>
    %19 = arith.addf %13, %18 : vector<64x128xf32>
    %c0_27 = arith.constant 0 : index
    %c1_28 = arith.constant 1 : index
    %c0_29 = arith.constant 0 : index
    %20 = vector.load %arg6[%c0_27, %c1_28, %c0_29] : memref<10x10x8xbf16, #tpu.memory_space<vmem>>, vector<8x8x8xbf16>
    %21 = vector.shape_cast %20 : vector<8x8x8xbf16> to vector<64x8xbf16>
    %c1_30 = arith.constant 1 : index
    %c0_31 = arith.constant 0 : index
    %c0_32 = arith.constant 0 : index
    %22 = vector.load %arg4[%c1_30, %c0_31, %c0_32] : memref<9x8x128xbf16, #tpu.memory_space<vmem>>, vector<1x8x128xbf16>
    %23 = vector.shape_cast %22 : vector<1x8x128xbf16> to vector<8x128xbf16>
    %cst_33 = arith.constant dense<0.000000e+00> : vector<64x128xf32>
    %24 = tpu.matmul %21, %23, %cst_33 {dimension_numbers = #tpu.dot_dimension_numbers<[1], [0], [0], [1], [0, 0, 1, 1], [], []>} : vector<64x8xbf16>, vector<8x128xbf16>, vector<64x128xf32> -> vector<64x128xf32>
    %25 = arith.addf %19, %24 : vector<64x128xf32>
    %c0_34 = arith.constant 0 : index
    %c2 = arith.constant 2 : index
    %c0_35 = arith.constant 0 : index
    %26 = vector.load %arg6[%c0_34, %c2, %c0_35] : memref<10x10x8xbf16, #tpu.memory_space<vmem>>, vector<8x8x8xbf16>
    %27 = vector.shape_cast %26 : vector<8x8x8xbf16> to vector<64x8xbf16>
    %c2_36 = arith.constant 2 : index
    %c0_37 = arith.constant 0 : index
    %c0_38 = arith.constant 0 : index
    %28 = vector.load %arg4[%c2_36, %c0_37, %c0_38] : memref<9x8x128xbf16, #tpu.memory_space<vmem>>, vector<1x8x128xbf16>
    %29 = vector.shape_cast %28 : vector<1x8x128xbf16> to vector<8x128xbf16>
    %cst_39 = arith.constant dense<0.000000e+00> : vector<64x128xf32>
    %30 = tpu.matmul %27, %29, %cst_39 {dimension_numbers = #tpu.dot_dimension_numbers<[1], [0], [0], [1], [0, 0, 1, 1], [], []>} : vector<64x8xbf16>, vector<8x128xbf16>, vector<64x128xf32> -> vector<64x128xf32>
    %31 = arith.addf %25, %30 : vector<64x128xf32>
    %c1_40 = arith.constant 1 : index
    %c0_41 = arith.constant 0 : index
    %c0_42 = arith.constant 0 : index
    %32 = vector.load %arg6[%c1_40, %c0_41, %c0_42] : memref<10x10x8xbf16, #tpu.memory_space<vmem>>, vector<8x8x8xbf16>
    %33 = vector.shape_cast %32 : vector<8x8x8xbf16> to vector<64x8xbf16>
    %c3 = arith.constant 3 : index
    %c0_43 = arith.constant 0 : index
    %c0_44 = arith.constant 0 : index
    %34 = vector.load %arg4[%c3, %c0_43, %c0_44] : memref<9x8x128xbf16, #tpu.memory_space<vmem>>, vector<1x8x128xbf16>
    %35 = vector.shape_cast %34 : vector<1x8x128xbf16> to vector<8x128xbf16>
    %cst_45 = arith.constant dense<0.000000e+00> : vector<64x128xf32>
    %36 = tpu.matmul %33, %35, %cst_45 {dimension_numbers = #tpu.dot_dimension_numbers<[1], [0], [0], [1], [0, 0, 1, 1], [], []>} : vector<64x8xbf16>, vector<8x128xbf16>, vector<64x128xf32> -> vector<64x128xf32>
    %37 = arith.addf %31, %36 : vector<64x128xf32>
    %c1_46 = arith.constant 1 : index
    %c1_47 = arith.constant 1 : index
    %c0_48 = arith.constant 0 : index
    %38 = vector.load %arg6[%c1_46, %c1_47, %c0_48] : memref<10x10x8xbf16, #tpu.memory_space<vmem>>, vector<8x8x8xbf16>
    %39 = vector.shape_cast %38 : vector<8x8x8xbf16> to vector<64x8xbf16>
    %c4 = arith.constant 4 : index
    %c0_49 = arith.constant 0 : index
    %c0_50 = arith.constant 0 : index
    %40 = vector.load %arg4[%c4, %c0_49, %c0_50] : memref<9x8x128xbf16, #tpu.memory_space<vmem>>, vector<1x8x128xbf16>
    %41 = vector.shape_cast %40 : vector<1x8x128xbf16> to vector<8x128xbf16>
    %cst_51 = arith.constant dense<0.000000e+00> : vector<64x128xf32>
    %42 = tpu.matmul %39, %41, %cst_51 {dimension_numbers = #tpu.dot_dimension_numbers<[1], [0], [0], [1], [0, 0, 1, 1], [], []>} : vector<64x8xbf16>, vector<8x128xbf16>, vector<64x128xf32> -> vector<64x128xf32>
    %43 = arith.addf %37, %42 : vector<64x128xf32>
    %c1_52 = arith.constant 1 : index
    %c2_53 = arith.constant 2 : index
    %c0_54 = arith.constant 0 : index
    %44 = vector.load %arg6[%c1_52, %c2_53, %c0_54] : memref<10x10x8xbf16, #tpu.memory_space<vmem>>, vector<8x8x8xbf16>
    %45 = vector.shape_cast %44 : vector<8x8x8xbf16> to vector<64x8xbf16>
    %c5 = arith.constant 5 : index
    %c0_55 = arith.constant 0 : index
    %c0_56 = arith.constant 0 : index
    %46 = vector.load %arg4[%c5, %c0_55, %c0_56] : memref<9x8x128xbf16, #tpu.memory_space<vmem>>, vector<1x8x128xbf16>
    %47 = vector.shape_cast %46 : vector<1x8x128xbf16> to vector<8x128xbf16>
    %cst_57 = arith.constant dense<0.000000e+00> : vector<64x128xf32>
    %48 = tpu.matmul %45, %47, %cst_57 {dimension_numbers = #tpu.dot_dimension_numbers<[1], [0], [0], [1], [0, 0, 1, 1], [], []>} : vector<64x8xbf16>, vector<8x128xbf16>, vector<64x128xf32> -> vector<64x128xf32>
    %49 = arith.addf %43, %48 : vector<64x128xf32>
    %c2_58 = arith.constant 2 : index
    %c0_59 = arith.constant 0 : index
    %c0_60 = arith.constant 0 : index
    %50 = vector.load %arg6[%c2_58, %c0_59, %c0_60] : memref<10x10x8xbf16, #tpu.memory_space<vmem>>, vector<8x8x8xbf16>
    %51 = vector.shape_cast %50 : vector<8x8x8xbf16> to vector<64x8xbf16>
    %c6 = arith.constant 6 : index
    %c0_61 = arith.constant 0 : index
    %c0_62 = arith.constant 0 : index
    %52 = vector.load %arg4[%c6, %c0_61, %c0_62] : memref<9x8x128xbf16, #tpu.memory_space<vmem>>, vector<1x8x128xbf16>
    %53 = vector.shape_cast %52 : vector<1x8x128xbf16> to vector<8x128xbf16>
    %cst_63 = arith.constant dense<0.000000e+00> : vector<64x128xf32>
    %54 = tpu.matmul %51, %53, %cst_63 {dimension_numbers = #tpu.dot_dimension_numbers<[1], [0], [0], [1], [0, 0, 1, 1], [], []>} : vector<64x8xbf16>, vector<8x128xbf16>, vector<64x128xf32> -> vector<64x128xf32>
    %55 = arith.addf %49, %54 : vector<64x128xf32>
    %c2_64 = arith.constant 2 : index
    %c1_65 = arith.constant 1 : index
    %c0_66 = arith.constant 0 : index
    %56 = vector.load %arg6[%c2_64, %c1_65, %c0_66] : memref<10x10x8xbf16, #tpu.memory_space<vmem>>, vector<8x8x8xbf16>
    %57 = vector.shape_cast %56 : vector<8x8x8xbf16> to vector<64x8xbf16>
    %c7 = arith.constant 7 : index
    %c0_67 = arith.constant 0 : index
    %c0_68 = arith.constant 0 : index
    %58 = vector.load %arg4[%c7, %c0_67, %c0_68] : memref<9x8x128xbf16, #tpu.memory_space<vmem>>, vector<1x8x128xbf16>
    %59 = vector.shape_cast %58 : vector<1x8x128xbf16> to vector<8x128xbf16>
    %cst_69 = arith.constant dense<0.000000e+00> : vector<64x128xf32>
    %60 = tpu.matmul %57, %59, %cst_69 {dimension_numbers = #tpu.dot_dimension_numbers<[1], [0], [0], [1], [0, 0, 1, 1], [], []>} : vector<64x8xbf16>, vector<8x128xbf16>, vector<64x128xf32> -> vector<64x128xf32>
    %61 = arith.addf %55, %60 : vector<64x128xf32>
    %c2_70 = arith.constant 2 : index
    %c2_71 = arith.constant 2 : index
    %c0_72 = arith.constant 0 : index
    %62 = vector.load %arg6[%c2_70, %c2_71, %c0_72] : memref<10x10x8xbf16, #tpu.memory_space<vmem>>, vector<8x8x8xbf16>
    %63 = vector.shape_cast %62 : vector<8x8x8xbf16> to vector<64x8xbf16>
    %c8 = arith.constant 8 : index
    %c0_73 = arith.constant 0 : index
    %c0_74 = arith.constant 0 : index
    %64 = vector.load %arg4[%c8, %c0_73, %c0_74] : memref<9x8x128xbf16, #tpu.memory_space<vmem>>, vector<1x8x128xbf16>
    %65 = vector.shape_cast %64 : vector<1x8x128xbf16> to vector<8x128xbf16>
    %cst_75 = arith.constant dense<0.000000e+00> : vector<64x128xf32>
    %66 = tpu.matmul %63, %65, %cst_75 {dimension_numbers = #tpu.dot_dimension_numbers<[1], [0], [0], [1], [0, 0, 1, 1], [], []>} : vector<64x8xbf16>, vector<8x128xbf16>, vector<64x128xf32> -> vector<64x128xf32>
    %67 = arith.addf %61, %66 : vector<64x128xf32>
    %68 = vector.shape_cast %67 : vector<64x128xf32> to vector<8x8x128xf32>
    %c0_76 = arith.constant 0 : index
    %c0_77 = arith.constant 0 : index
    %c0_78 = arith.constant 0 : index
    %c0_79 = arith.constant 0 : index
    %69 = vector.load %arg5[%c0_76, %c0_77, %c0_78, %c0_79] : memref<1x8x8x128xf32, #tpu.memory_space<vmem>>, vector<1x8x8x128xf32>
    %70 = vector.shape_cast %69 : vector<1x8x8x128xf32> to vector<8x8x128xf32>
    %71 = vector.shape_cast %68 : vector<8x8x128xf32> to vector<1x8x8x128xf32>
    tpu.vector_store %arg5[%c0_76, %c0_77, %c0_78, %c0_79], %71 {strides = array<i32>} : memref<1x8x8x128xf32, #tpu.memory_space<vmem>>, vector<1x8x8x128xf32>,
    return
  }
  func.func @transform_0(%arg0: i32, %arg1: i32) -> (i32, i32, i32, i32) {
    %c0_i32 = arith.constant 0 : i32
    %c0_i32_0 = arith.constant 0 : i32
    %c0_i32_1 = arith.constant 0 : i32
    return %arg0, %arg1, %c0_i32, %c0_i32_0 : i32, i32, i32, i32
  }
  func.func @transform_1(%arg0: i32, %arg1: i32) -> (i32, i32, i32, i32, i32) {
    %c0_i32 = arith.constant 0 : i32
    %c0_i32_0 = arith.constant 0 : i32
    %c0_i32_1 = arith.constant 0 : i32
    %c0_i32_2 = arith.constant 0 : i32
    return %arg0, %arg1, %c0_i32, %c0_i32_0, %c0_i32_1 : i32, i32, i32, i32, i32
  }
  func.func @transform_2(%arg0: i32, %arg1: i32) -> (i32, i32, i32) {
    %c0_i32 = arith.constant 0 : i32
    %c0_i32_0 = arith.constant 0 : i32
    %c0_i32_1 = arith.constant 0 : i32
    %c0_i32_2 = arith.constant 0 : i32
    return %c0_i32, %c0_i32_0, %c0_i32_1 : i32, i32, i32
  }
  func.func @transform_3(%arg0: i32, %arg1: i32) -> (i32, i32, i32, i32) {
    %c0_i32 = arith.constant 0 : i32
    %c0_i32_0 = arith.constant 0 : i32
    %c0_i32_1 = arith.constant 0 : i32
    return %arg0, %arg1, %c0_i32, %c0_i32_0 : i32, i32, i32, i32
  }
}

</mosaic_0001>

<bundles_post_ra>
// kernel: tpu_custom_call.1
= control target key start
LH: loop header
LB: loop body
LE: loop exit
PB: predicated region body
PF: predicated region fallthrough
CT: control target
= control target key end

     0   :  { %8 = vsyncpa [#allocation4], 0  ;;  %s2993_s0 = inlined_call_operand.vmem [shape: bf16[2,8,10,8], index: 0, kind: input, shape index: {}]   ;;  %s2994_s1 = inlined_call_operand.vmem [shape: bf16[2,1,2,10,8], index: 1, kind: input, shape index: {}]   ;;  %s2995_s2 = inlined_call_operand.vmem [shape: bf16[9,8,128], index: 2, kind: input, shape index: {}]   ;;  %s2996_s3 = inlined_call_operand.hbm [shape: f32[2,8,8,128], index: 3, kind: output, shape index: {}]  }
   0x1   :  { %10 = vsyncpa [#allocation4 + $0x1], 0  ;;  %s2415_s12 = smov 0   ;;  %s2417_s13 = smov 0  }
   0x2   :  { %s2419_s14 = smov 0   ;;  %s2421_s15 = smov 0  }
   0x3   :  { %s2423_s16 = smov 0   ;;  %s2425_s17 = smov 0  }
   0x4 LB: > { %s1912_s18 = sadd.s32 4294967295, %s2390_s17   ;;  %s1913_s19 = sadd.s32 4294967294, %s2390_s17   ;;  %s2390_s17 = sphi %s2425_s17, %s16_s17   ;;  %s2386_s16 = sphi %s2423_s16, %s3007_s16   ;;  %s2382_s15 = sphi %s2421_s15, %s3006_s15   ;;  %s2378_s14 = sphi %s2419_s14, %s3005_s14   ;;  %s2374_s13 = sphi %s2417_s13, %s3004_s13   ;;  %s2370_s12 = sphi %s2415_s12, %s3003_s12  }
   0x5   : > { %s28_s20 = sadd.s32 1, %s2386_s16  ;;  %s114_s21 = sadd.s32 1, %s2378_s14 }
   0x6   : > { %p30_p0 = scmp.ge.s32.totalorder %s28_s20, 2  ;;  %p124_p1 = scmp.ne.s32.totalorder %s2378_s14, %s2374_s13 }
   0x7   : > { %p125_p2 = scmp.eq.s32.totalorder %s1912_s18, 1  ;;  %p130_p3 = scmp.ne.s32.totalorder %s2374_s13, %s2370_s12 }
   0x8   : > { %s3009_s20 = smov (%p30_p0, %s28_s20), 0  ;;  %p131_p5 = scmp.eq.s32.totalorder %s1913_s19, 1 }
   0x9   : > { %p2455_p4 = por %p125_p2, %p124_p1  ;;  %s109_s23 = ssub.s32 %s2386_s16, %s3009_s20 }
   0xa   : > { %p1916_p6 = scmp.ge.s32.totalorder %s2390_s17, 1  ;;  %p112_p7 = scmp.eq.s32.totalorder %s109_s23, 0 }
   0xb   : > { %p2462_p8 = por %p131_p5, %p130_p3  ;;  %p178_p9 = scmp.lt.s32.totalorder %s2390_s17, 3 }
   0xc   : > { %s2468_s25 = scalar_select %p112_p7, %s2378_s14, %s114_s21  }
   0xd   : > { %p179_p10 = pnand %p1916_p6, %p178_p9 }
   0xe   : > { %v1924_v0 = vld [vmem:[%s2995_s2 + $0x4] sm:$0xf] (!%p179_p10)  ;;  %vm442_vm0 = vcmask (!%p179_p10), 1043456   ;;  %v2476_v1 = vld [vmem:[%s2995_s2 + $0x10] sm:$0xf] (!%p179_p10)  ;;  %p217_p11 = scmp.lt.s32.totalorder (!%p179_p10), %s2382_s15, 1 }
   0xf   : > { %182 = sbr.rel (%p179_p10) target bundleno = 369 (0x171), region = 32  ;;  %2237 = vmatprep.subr.msk.bf16.mxu1 (!%p179_p10), %vm442_vm0, %v1924_v0  ;;  %2241 = vmatprep.subr.msk.bf16.mxu0 (!%p179_p10), %vm442_vm0, %v2476_v1  ;;  %v444_v2 = vsel (!%p179_p10), %vm442_vm0, %v1924_v0, 0  ;;  %v2485_v3 = vsel (!%p179_p10), %vm442_vm0, %v2476_v1, 0  ;;  %v2490_v4 = vld [vmem:[%s2995_s2] sm:$0xf] (!%p179_p10)  ;;  %vm255_vm1 = vcmask (!%p179_p10), 60416  }
  0x10   : > { %2082 = vmatpush3.bf16.msra.mxu1 (!%p179_p10), %v444_v2  ;;  %2122 = vmatpush3.bf16.msra.mxu0 (!%p179_p10), %v2485_v3  ;;  %v2499_v5 = vld [vmem:[%s2995_s2 + $0x14] sm:$0xf] (!%p179_p10)  ;;  %vm257_vm2 = vcmask (!%p179_p10), 57344   ;;  %vm300_vm3 = vsmask.f32 (!%p179_p10), 3328  ;;  %vm429_vm5 = vcmask (!%p179_p10), 64512  }
  0x11   : > { %2238 = vmatprep.subr.msk.bf16.mxu1 (!%p179_p10), %vm442_vm0, %v2490_v4  ;;  %2243 = vmatprep.subr.msk.bf16.mxu0 (!%p179_p10), %vm442_vm0, %v2499_v5  ;;  %vm301_vm4 = vsmask.f32 (!%p179_p10), 7440  ;;  %v2569_v37 = vsel (!%p179_p10), %vm442_vm0, %v2490_v4, 0  ;;  %v2573_v38 = vsel (!%p179_p10), %vm442_vm0, %v2499_v5, 0  ;;  %v2582_v52 = vld [vmem:[%s2995_s2 + $0x18] sm:$0xf] (!%p179_p10) }
  0x12   : > { %vm2586_vm6 = vmor (!%p179_p10), %vm300_vm3, %vm301_vm4  ;;  %vm635_vm7 = vcmask (!%p179_p10), 1042432   ;;  %vm636_vm8 = vcmask (!%p179_p10), 1046532   ;;  %s2392_s28 = smov (!%p179_p10), [#allocation3]  }
  0x13   : > { %vm2676_vm9 = vmor (!%p179_p10), %vm635_vm7, %vm636_vm8  ;;  %s2316_s29 = sshll.u32 (!%p179_p10), %s2392_s28, 4  ;;  %s2317_s29 = int_to_ptr.vmem [resolvable:$false] %s2316_s29 }
  0x14   : > { %s2318_s30 = scalar_lea.vmem (!%p179_p10), %s2317_s29, 2048 }
  0x16   : > { %s218_s5 = scalar_select %p217_p11, %s2382_s15, 1 }
  0x18   : > { %s2033_s8 = sshll.u32 %s218_s5, 6  ;;  %s2034_s9 = sshll.u32 %s218_s5, 4 }
  0x19   : > { %s2506_s18 = scalar_lea.vmem %s2993_s0, %s2033_s8  ;;  %s2511_s23 = scalar_lea.vmem %s2994_s1, %s2034_s9 }
  0x1a   : > { %v238_v6 = vld [vmem:[%s2506_s18] sm:$0xf]  ;;  %v239_v7 = vld [vmem:[%s2506_s18 + $0x4] sm:$0x1]  ;;  %v240_v10 = vld [vmem:[%s2506_s18 + $0x8] sm:$0xf] }
  0x1b   : > { %v273_v8 = vld [vmem:[%s2511_s23] sm:$0xf]  ;;  %256 = vst.msk [vmem:[#allocation2 + $0x8] sm:$0xf] %vm255_vm1, %v238_v6  ;;  %v274_v9 = vld [vmem:[%s2511_s23 + $0x4] sm:$0x1] }
  0x1c   : > { %258 = vst.msk [vmem:[#allocation2 + $0xc] sm:$0x1] %vm257_vm2, %v239_v7  ;;  %v241_v11 = vld [vmem:[%s2506_s18 + $0xc] sm:$0x1]  ;;  %276 = vst.msk [vmem:[#allocation2 + $0x4] sm:$0x1] %vm257_vm2, %v274_v9 }
  0x1d   : > { %275 = vst.msk [vmem:[#allocation2] sm:$0xf] %vm255_vm1, %v273_v8  ;;  %259 = vst.msk [vmem:[#allocation2 + $0x10] sm:$0xf] %vm255_vm1, %v240_v10  ;;  %v242_v12 = vld [vmem:[%s2506_s18 + $0x10] sm:$0xf] }
  0x1e   : > { %260 = vst.msk [vmem:[#allocation2 + $0x14] sm:$0x1] %vm257_vm2, %v241_v11  ;;  %v243_v13 = vld [vmem:[%s2506_s18 + $0x14] sm:$0x1]  ;;  %v244_v14 = vld [vmem:[%s2506_s18 + $0x18] sm:$0xf] }
  0x1f   : > { %261 = vst.msk [vmem:[#allocation2 + $0x18] sm:$0xf] %vm255_vm1, %v242_v12  ;;  %v245_v15 = vld [vmem:[%s2506_s18 + $0x1c] sm:$0x1]  ;;  %263 = vst.msk [vmem:[#allocation2 + $0x20] sm:$0xf] %vm255_vm1, %v244_v14 }
  0x20   : > { %262 = vst.msk [vmem:[#allocation2 + $0x1c] sm:$0x1] %vm257_vm2, %v243_v13  ;;  %v246_v16 = vld [vmem:[%s2506_s18 + $0x20] sm:$0xf]  ;;  %v247_v17 = vld [vmem:[%s2506_s18 + $0x24] sm:$0x1] }
  0x21   : > { %264 = vst.msk [vmem:[#allocation2 + $0x24] sm:$0x1] %vm257_vm2, %v245_v15  ;;  %266 = vst.msk [vmem:[#allocation2 + $0x2c] sm:$0x1] %vm257_vm2, %v247_v17  ;;  %v248_v18 = vld [vmem:[%s2506_s18 + $0x28] sm:$0xf] }
  0x22   : > { %265 = vst.msk [vmem:[#allocation2 + $0x28] sm:$0xf] %vm255_vm1, %v246_v16  ;;  %v249_v19 = vld [vmem:[%s2506_s18 + $0x2c] sm:$0x1]  ;;  %v250_v20 = vld [vmem:[%s2506_s18 + $0x30] sm:$0xf] }
  0x23   : > { %v251_v21 = vld [vmem:[%s2506_s18 + $0x34] sm:$0x1]  ;;  %267 = vst.msk [vmem:[#allocation2 + $0x30] sm:$0xf] %vm255_vm1, %v248_v18  ;;  %269 = vst.msk [vmem:[#allocation2 + $0x38] sm:$0xf] %vm255_vm1, %v250_v20 }
  0x24   : > { %268 = vst.msk [vmem:[#allocation2 + $0x34] sm:$0x1] %vm257_vm2, %v249_v19  ;;  %v252_v22 = vld [vmem:[%s2506_s18 + $0x38] sm:$0xf]  ;;  %270 = vst.msk [vmem:[#allocation2 + $0x3c] sm:$0x1] %vm257_vm2, %v251_v21 }
  0x25   : > { %v253_v23 = vld [vmem:[%s2506_s18 + $0x3c] sm:$0x1]  ;;  %271 = vst.msk [vmem:[#allocation2 + $0x40] sm:$0xf] %vm255_vm1, %v252_v22  ;;  %v1922_v24 = vld [vmem:[%s2511_s23 + $0x8] sm:$0xf] }
  0x26   : > { %272 = vst.msk [vmem:[#allocation2 + $0x44] sm:$0x1] %vm257_vm2, %v253_v23  ;;  %v1923_v25 = vld [vmem:[%s2511_s23 + $0xc] sm:$0x1]  ;;  %v2552_v26 = vld [vmem:[#allocation2] sm:$0xf] }
  0x27   : > { %281 = vst.msk [vmem:[#allocation2 + $0x48] sm:$0xf] %vm255_vm1, %v1922_v24  ;;  %v2554_v27 = vld [vmem:[#allocation2 + $0x8] sm:$0xf]  ;;  %v2556_v28 = vld [vmem:[#allocation2 + $0xc] sm:$0x1] }
  0x28   : > { %282 = vst.msk [vmem:[#allocation2 + $0x4c] sm:$0x1] %vm257_vm2, %v1923_v25  ;;  %v2559_v29 = vld [vmem:[#allocation2 + $0x4] sm:$0x1]  ;;  %v304_v30 = vshrl.u32 %v2552_v26, 16  ;;  %v307_v31 = vshll.u32 %v2552_v26, 16 }
  0x29   : > { %v318_v32 = vshrl.u32 %v2554_v27, 16  ;;  %v321_v33 = vshll.u32 %v2554_v27, 16  ;;  %v313_v34 = vshll.u32 %v2559_v29, 16  ;;  %v327_v35 = vshll.u32 %v2556_v28, 16  ;;  %v890_v36 = vld [vmem:[#allocation2 + $0x8] sm:$0xf] }
  0x2a   : > { %v306_v39 = vrot.slane %v304_v30, 4  ;;  %v309_v40 = vrot.slane %v307_v31, 5  ;;  %v2575_v43 = vld [vmem:[#allocation2 + $0xc] sm:$0x1]  ;;  %v892_v46 = vld [vmem:[#allocation2 + $0x10] sm:$0xf] }
  0x2b   : > { %v320_v41 = vrot.slane %v318_v32, 4  ;;  %v323_v42 = vrot.slane %v321_v33, 5  ;;  %v315_v44 = vrot.slane %v313_v34, 5  ;;  %v329_v45 = vrot.slane %v327_v35, 5  ;;  %v2577_v47 = vld [vmem:[#allocation2 + $0x14] sm:$0x1] }
  0x2c   : > { %v310_v48 = vor.u32 %v309_v40, %v306_v39  ;;  %v907_v50 = vshrl.u32 %v890_v36, 16  ;;  %v910_v51 = vshll.u32 %v890_v36, 16  ;;  %v916_v54 = vshll.u32 %v2575_v43, 16  ;;  %v2592_v58 = vld [vmem:[#allocation2 + $0x10] sm:$0xf]  ;;  %s213_s9 = sand.u32 1, %s2374_s13  }
  0x2d   : > { %v324_v49 = vor.u32 %v323_v42, %v320_v41  ;;  %v921_v55 = vshrl.u32 %v892_v46, 16  ;;  %v924_v56 = vshll.u32 %v892_v46, 16  ;;  %v930_v57 = vshll.u32 %v2577_v47, 16  ;;  %v2594_v63 = vld [vmem:[#allocation2 + $0x18] sm:$0xf]  ;;  %s1917_s10 = sshll.u32 %s213_s9, 6 }
  0x2e   : > { %v311_v59 = vrot.slane %v310_v48, 4  ;;  %v909_v61 = vrot.slane %v907_v50, 4  ;;  %v912_v62 = vrot.slane %v910_v51, 5  ;;  %v918_v0 = vrot.slane %v916_v54, 5  ;;  %v2596_v5 = vld [vmem:[#allocation2 + $0x14] sm:$0x1] }
  0x2f   : > { %v325_v60 = vrot.slane %v324_v49, 4  ;;  %v923_v2 = vrot.slane %v921_v55, 4  ;;  %v926_v4 = vrot.slane %v924_v56, 5  ;;  %v2600_v6 = vsel %vm442_vm0, %v2582_v52, 0  ;;  %v2606_v11 = vld [vmem:[#allocation2 + $0x1c] sm:$0x1] }
  0x30   : > { %v316_v7 = vsel %vm2586_vm6, %v311_v59, %v315_v44  ;;  %v913_v9 = vor.u32 %v912_v62, %v909_v61  ;;  %v932_v10 = vrot.slane %v930_v57, 5  ;;  %v1146_v14 = vrot.slane %v2575_v43, 5  ;;  %v894_v24 = vld [vmem:[#allocation2 + $0x18] sm:$0xf]  ;;  %v2618_v32 = vld [vmem:[#allocation2 + $0x1c] sm:$0x1] }
  0x31   : > { %v330_v8 = vsel %vm2586_vm6, %v325_v60, %v329_v45  ;;  %v927_v13 = vor.u32 %v926_v4, %v923_v2  ;;  %v332_v15 = vshrl.u32 %v2592_v58, 16  ;;  %v335_v17 = vshll.u32 %v2592_v58, 16  ;;  %v896_v33 = vld [vmem:[#allocation2 + $0x20] sm:$0xf]  ;;  %v2623_v40 = vld [vmem:[#allocation2 + $0x24] sm:$0x1] }
  0x32   : > { %v1925_v12 = vcombine.low %v316_v7, %v330_v8  ;;  %v914_v16 = vrot.slane %v913_v9, 4  ;;  %v341_v18 = vshll.u32 %v2596_v5, 16  ;;  %v346_v19 = vshrl.u32 %v2594_v63, 16  ;;  %v2628_v57 = vld [vmem:[#allocation2 + $0x20] sm:$0xf]  ;;  %s215_s11 = scalar_lea.vmem [#allocation3], %s1917_s10 }
  0x33   : > { %v928_v20 = vrot.slane %v927_v13, 4  ;;  %v334_v21 = vrot.slane %v332_v15, 4  ;;  %v349_v22 = vshll.u32 %v2594_v63, 16  ;;  %v355_v23 = vshll.u32 %v2606_v11, 16  ;;  %v2635_v9 = vld [vmem:[#allocation2 + $0x28] sm:$0xf] }
  0x34   : > { %2083 = vmatprep.mubr.msk.bf16.mxu1 %vm429_vm5, %v1925_v12  ;;  %v919_v25 = vsel %vm2586_vm6, %v914_v16, %v918_v0  ;;  %v337_v30 = vrot.slane %v335_v17, 5  ;;  %v348_v31 = vrot.slane %v346_v19, 4  ;;  %v1150_v35 = vrot.slane %v2577_v47, 5  ;;  %v2630_v0 = vld [vmem:[#allocation2 + $0x24] sm:$0x1]  ;;  %s2035_s18 = sshll.u32 %s2382_s15, 10 }
  0x35   : > { %v933_v34 = vsel %vm2586_vm6, %v928_v20, %v932_v10  ;;  %v343_v36 = vrot.slane %v341_v18, 5  ;;  %v351_v39 = vrot.slane %v349_v22, 5  ;;  %v357_v44 = vrot.slane %v355_v23, 5  ;;  %v2640_v15 = vld [vmem:[#allocation2 + $0x2c] sm:$0x1]  ;;  %s1809_s19 = sshll.u32 %s215_s11, 4  ;;  %s2941_s26 = scalar_lea.hbm %s2996_s3, %s2035_s18  ;;  %s2943_s19 = int_to_ptr.vmem [resolvable:$true] %s1809_s19 }
  0x36   : > { %v1968_v41 = vcombine.low %v919_v25, %v933_v34  ;;  %v338_v42 = vor.u32 %v337_v30, %v334_v21  ;;  %v935_v45 = vshrl.u32 %v894_v24, 16  ;;  %v938_v48 = vshll.u32 %v894_v24, 16  ;;  %v2645_v21 = vld [vmem:[#allocation2 + $0x30] sm:$0xf]  ;;  %v2650_v22 = vld [vmem:[%s2995_s2 + $0x8] sm:$0xf]  ;;  %p2319_p1 = scmp.lt.s32.totalorder %s2943_s19, %s2317_s29 }
  0x37   : > { %v352_v46 = vor.u32 %v351_v39, %v348_v31  ;;  %v944_v49 = vshll.u32 %v2618_v32, 16  ;;  %v949_v50 = vshrl.u32 %v896_v33, 16  ;;  %v952_v55 = vshll.u32 %v896_v33, 16  ;;  %v2654_v31 = vld [vmem:[#allocation2 + $0x38] sm:$0xf]  ;;  %s2947_s15 = scalar_lea.sflag [#allocation4], %s213_s9 }
  0x38   : > { %2123 = vmatprep.mubr.msk.bf16.mxu0 %vm429_vm5, %v1968_v41  ;;  %v339_v51 = vrot.slane %v338_v42, 4  ;;  %v937_v54 = vrot.slane %v935_v45, 4  ;;  %v958_v56 = vshll.u32 %v2623_v40, 16  ;;  %v940_v60 = vrot.slane %v938_v48, 5  ;;  %v2658_v41 = vld [vmem:[#allocation2 + $0x34] sm:$0x1] }
  0x39   : > { %v353_v59 = vrot.slane %v352_v46, 4  ;;  %v946_v61 = vrot.slane %v944_v49, 5  ;;  %v951_v62 = vrot.slane %v949_v50, 4  ;;  %v954_v4 = vrot.slane %v952_v55, 5  ;;  %v2663_v46 = vld [vmem:[#allocation2 + $0x3c] sm:$0x1] }
  0x3a   : > { %v344_v2 = vsel %vm2586_vm6, %v339_v51, %v343_v36  ;;  %v960_v7 = vrot.slane %v958_v56, 5  ;;  %v1154_v8 = vrot.slane %v2618_v32, 5  ;;  %v941_v12 = vor.u32 %v940_v60, %v937_v54  ;;  %v1120_v55 = vld [vmem:[#allocation2 + $0x8] sm:$0xe]  ;;  %v1121_v56 = vld [vmem:[#allocation2 + $0x10] sm:$0xe] }
  0x3b   : > { %v358_v10 = vsel %vm2586_vm6, %v353_v59, %v357_v44  ;;  %v1158_v13 = vrot.slane %v2623_v40, 5  ;;  %v360_v16 = vshrl.u32 %v2628_v57, 16  ;;  %v955_v18 = vor.u32 %v954_v4, %v951_v62  ;;  %v1122_v62 = vld [vmem:[#allocation2 + $0x18] sm:$0xe]  ;;  %v2002_v40 = vld [vmem:[%s2995_s2 + $0x1c] sm:$0xf] }
  0x3c   : > { %v1926_v17 = vcombine.low %v344_v2, %v358_v10  ;;  %v363_v19 = vshll.u32 %v2628_v57, 16  ;;  %v369_v20 = vshll.u32 %v2630_v0, 16  ;;  %v942_v23 = vrot.slane %v941_v12, 4  ;;  %v1126_v47 = vld [vmem:[#allocation2 + $0x38] sm:$0xe]  ;;  %s2312_s27 = scalar_lea.vmem %s2943_s19, 1024 }
  0x3d   : > { %v362_v24 = vrot.slane %v360_v16, 4  ;;  %v374_v25 = vshrl.u32 %v2635_v9, 16  ;;  %v377_v30 = vshll.u32 %v2635_v9, 16  ;;  %v956_v33 = vrot.slane %v955_v18, 4  ;;  %v1123_v16 = vld [vmem:[#allocation2 + $0x20] sm:$0xe]  ;;  %p2313_p12 = scmp.ne.s32.totalorder %s2943_s19, %s2312_s27  ;;  %p2320_p2 = scmp.lt.s32.totalorder %s2318_s30, %s2312_s27 }
  0x3e   : > { %2084 = vmatmul.mubr.msk.bf16.vlgmr.msra.gmra.mrb[0].mxu1 %vm429_vm5, %v1926_v17  ;;  %v365_v34 = vrot.slane %v363_v19, 5  ;;  %v371_v36 = vrot.slane %v369_v20, 5  ;;  %v383_v39 = vshll.u32 %v2640_v15, 16  ;;  %v947_v42 = vsel %vm2586_vm6, %v942_v23, %v946_v61 }
  0x3f   : > { %2092 = vmatpush3.bf16.msra.mxu1 %v2569_v37  ;;  %v376_v44 = vrot.slane %v374_v25, 4  ;;  %v379_v45 = vrot.slane %v377_v30, 5  ;;  %v388_v48 = vshrl.u32 %v2645_v21, 16  ;;  %v961_v49 = vsel %vm2586_vm6, %v956_v33, %v960_v7  ;;  %v1124_v33 = vld [vmem:[#allocation2 + $0x28] sm:$0xe]  ;;  %p2314_p13 = pnand %p2313_p12, %p2455_p4  ;;  %p2321_p3 = por %p2320_p2, %p2319_p1 }
  0x40   : > { %v366_v50 = vor.u32 %v365_v34, %v362_v24  ;;  %v385_v51 = vrot.slane %v383_v39, 5  ;;  %v391_v54 = vshll.u32 %v2645_v21, 16  ;;  %2239 = vmatprep.subr.msk.bf16.mxu1 %vm442_vm0, %v2650_v22  ;;  %v1969_v37 = vcombine.low %v947_v42, %v961_v49 }
  0x41   : > { %v380_v59 = vor.u32 %v379_v45, %v376_v44  ;;  %v390_v60 = vrot.slane %v388_v48, 4  ;;  %v397_v61 = vshll.u32 %v2658_v41, 16  ;;  %v402_v10 = vshrl.u32 %v2654_v31, 16  ;;  %p2315_p0 = pneg %p2314_p13 }
  0x42   : > { %v367_v2 = vrot.slane %v366_v50, 4  ;;  %v393_v4 = vrot.slane %v391_v54, 5  ;;  %v405_v7 = vshll.u32 %v2654_v31, 16  ;;  %2124 = vmatmul.mubr.msk.bf16.vlgmr.msra.gmra.mrb[0].mxu0 %vm429_vm5, %v1969_v37  ;;  %v411_v19 = vshll.u32 %v2663_v46, 16  ;;  %v2695_v50 = vld [vmem:[#allocation2 + $0x34] sm:$0x1] }
  0x43   : > { %v381_v17 = vrot.slane %v380_v59, 4  ;;  %v399_v18 = vrot.slane %v397_v61, 5  ;;  %v1976_v20 = vrot.slane %v1120_v55, 9  ;;  %2132 = vmatpush3.bf16.msra.mxu0 %v2573_v38  ;;  %v404_v25 = vrot.slane %v402_v10, 4  ;;  %v2693_v38 = vld [vmem:[#allocation2 + $0x2c] sm:$0x1]  ;;  %p2322_p5 = pnand %p2321_p3, %p2315_p0 }
  0x44   : > { %v372_v23 = vsel %vm2586_vm6, %v367_v2, %v371_v36  ;;  %v394_v24 = vor.u32 %v393_v4, %v390_v60  ;;  %v407_v30 = vrot.slane %v405_v7, 5  ;;  %v413_v39 = vrot.slane %v411_v19, 5  ;;  %2244 = vmatprep.subr.msk.bf16.mxu0 %vm442_vm0, %v2582_v52  ;;  %v1125_v54 = vld [vmem:[#allocation2 + $0x30] sm:$0xe]  ;;  %v2701_v55 = vld [vmem:[#allocation2 + $0x3c] sm:$0x1] }
  0x45   : > { %v386_v34 = vsel %vm2586_vm6, %v381_v17, %v385_v51  ;;  %v1147_v42 = vsel %vm2676_vm9, %v1976_v20, %v1146_v14  ;;  %v1977_v44 = vrot.slane %v1121_v56, 9  ;;  %v1978_v49 = vrot.slane %v1122_v62, 9  ;;  %v1127_v4 = vld [vmem:[#allocation2 + $0x40] sm:$0xe]  ;;  %v612_v17 = vld [vmem:[#allocation2 + $0x8] sm:$0xe] }
  0x46   : > { %v1927_v36 = vcombine.low %v372_v23, %v386_v34  ;;  %v395_v45 = vrot.slane %v394_v24, 4  ;;  %v408_v48 = vor.u32 %v407_v30, %v404_v25  ;;  %v1979_v51 = vrot.slane %v1123_v16, 9  ;;  %v614_v25 = vld [vmem:[#allocation2 + $0x18] sm:$0xe] }
  0x47   : > { %v1151_v43 = vsel %vm2676_vm9, %v1977_v44, %v1150_v35  ;;  %v1980_v14 = vrot.slane %v1124_v33, 9  ;;  %v1155_v59 = vsel %vm2676_vm9, %v1978_v49, %v1154_v8  ;;  %v1162_v60 = vrot.slane %v2693_v38, 5  ;;  %v2721_v8 = vld [vmem:[#allocation2 + $0x44] sm:$0x1] }
  0x48   : > { %2087 = vmatprep.mubr.msk.bf16.mxu1 %vm429_vm5, %v1927_v36  ;;  %v400_v52 = vsel %vm2586_vm6, %v395_v45, %v399_v18  ;;  %v409_v56 = vrot.slane %v408_v48, 4  ;;  %v1985_v37 = vcombine.low %v1147_v42, %v1151_v43  ;;  %v1159_v35 = vsel %vm2676_vm9, %v1979_v51, %v1158_v13  ;;  %v2729_v13 = vld [vmem:[%s2995_s2 + $0xc] sm:$0xf]  ;;  %v613_v18 = vld [vmem:[#allocation2 + $0x10] sm:$0xe] }
  0x49   : > { %v1981_v61 = vrot.slane %v1125_v54, 9  ;;  %v1166_v62 = vrot.slane %v2695_v50, 5  ;;  %v1933_v32 = vcombine.low %v2552_v26, %v2554_v27  ;;  %v1986_v7 = vcombine.low %v1155_v59, %v1159_v35  ;;  %v611_v27 = vld [vmem:[#allocation2] sm:$0xe]  ;;  %v1397_v51 = vld [vmem:[#allocation2 + $0x10] sm:$0xf] }
  0x4a   : > { %v414_v2 = vsel %vm2586_vm6, %v409_v56, %v413_v39  ;;  %2133 = vmatprep.mubr.msk.bf16.mxu0 %vm429_vm5, %v1985_v37  ;;  %v1163_v16 = vsel %vm2676_vm9, %v1980_v14, %v1162_v60  ;;  %v640_v19 = vrot.slane %v2559_v29, 5  ;;  %v1982_v23 = vrot.slane %v1126_v47, 9  ;;  %v615_v42 = vld [vmem:[#allocation2 + $0x20] sm:$0xe]  ;;  %v616_v56 = vld [vmem:[#allocation2 + $0x28] sm:$0xe] }
  0x4b   : > { %v1928_v10 = vcombine.low %v400_v52, %v414_v2  ;;  %v1167_v26 = vsel %vm2676_vm9, %v1981_v61, %v1166_v62  ;;  %v1170_v24 = vrot.slane %v2701_v55, 5  ;;  %v644_v30 = vrot.slane %v2556_v28, 5  ;;  %v1399_v37 = vld [vmem:[#allocation2 + $0x18] sm:$0xf]  ;;  %v2783_v35 = vld [vmem:[#allocation2 + $0x14] sm:$0x1] }
  0x4c   : > { %v1987_v20 = vcombine.low %v1163_v16, %v1167_v26  ;;  %v648_v33 = vrot.slane %v2596_v5, 5  ;;  %v1983_v34 = vrot.slane %v1127_v4, 9  ;;  %v1174_v39 = vrot.slane %v2721_v8, 5  ;;  %v2787_v62 = vld [vmem:[#allocation2 + $0x1c] sm:$0x1] }
  0x4d   : > { %2088 = vmatmul.mubr.msk.bf16.gmra.mrb[4].mxu1 %vm429_vm5, %v1928_v10  ;;  %v652_v44 = vrot.slane %v2606_v11, 5  ;;  %v1941_v29 = vrot.slane %v611_v27, 9  ;;  %v1942_v36 = vrot.slane %v612_v17, 9  ;;  %v1943_v45 = vrot.slane %v613_v18, 9  ;;  %v1401_v2 = vld [vmem:[#allocation2 + $0x20] sm:$0xf] }
  0x4e   : > { %2093 = vmatprep.mubr.msk.bf16.mxu1 %vm429_vm5, %v1933_v32  ;;  %2134 = vmatmul.mubr.msk.bf16.vlgmr.msra.gmra.mrb[0].mxu0 %vm429_vm5, %v1986_v7  ;;  %v697_v28 = vsel %vm442_vm0, %v2650_v22, 0  ;;  %v2747_v5 = vsel %vm442_vm0, %v2002_v40, 0  ;;  %v1944_v48 = vrot.slane %v614_v25, 9  ;;  %v2751_v49 = vsel %vm442_vm0, %v2729_v13, 0  ;;  %v1403_v26 = vld [vmem:[#allocation2 + $0x28] sm:$0xf] }
  0x4f   : > { %2142 = vmatpush3.bf16.msra.mxu0 %v2600_v6  ;;  %2137 = vmatprep.mubr.msk.bf16.mxu0 %vm429_vm5, %v1987_v20  ;;  %v1171_v11 = vsel %vm2676_vm9, %v1982_v23, %v1170_v24  ;;  %v1175_v54 = vsel %vm2676_vm9, %v1983_v34, %v1174_v39  ;;  %v1945_v43 = vrot.slane %v615_v42, 9  ;;  %v656_v22 = vrot.slane %v2630_v0, 5  ;;  %v2304_v0 = vld [vmem:[#allocation2 + $0x10] ss:$8 sps:$4 sm:$0xff]   ;;  %v2808_v34 = vld [vmem:[#allocation2 + $0x24] sm:$0x1] }
  0x50   : > { %v1934_v14 = vcombine.low %v2592_v58, %v2594_v63  ;;  %2245 = vmatprep.subr.msk.bf16.mxu0 %vm442_vm0, %v2002_v40  ;;  %v2765_v6 = vsel %vm2676_vm9, %v1941_v29, %v640_v19  ;;  %v2769_v52 = vsel %vm2676_vm9, %v1942_v36, %v644_v30  ;;  %v1935_v59 = vcombine.low %v2628_v57, %v2635_v9  ;;  %v2781_v63 = vld [vmem:[#allocation2 + $0x30] sm:$0xe]  ;;  %v618_v27 = vld [vmem:[#allocation2 + $0x38] sm:$0xe] }
  0x51   : > { %v2775_v47 = vsel %vm2676_vm9, %v1943_v45, %v648_v33  ;;  %v2779_v58 = vsel %vm2676_vm9, %v1944_v48, %v652_v44  ;;  %v1988_v60 = vcombine.low %v1171_v11, %v1175_v54  ;;  %v1936_v61 = vcombine.low %v2645_v21, %v2654_v31  ;;  %v2305_v44 = vld [vmem:[#allocation2 + $0x20] ss:$8 sps:$4 sm:$0xff]   ;;  %v2306_v48 = vld [vmem:[#allocation2 + $0x30] ss:$8 sps:$4 sm:$0xff]  }
  0x52   : > { %v1414_v57 = vshrl.u32 %v1397_v51, 16  ;;  %v1417_v9 = vshll.u32 %v1397_v51, 16  ;;  %v1950_v32 = vcombine.low %v2765_v6, %v2769_v52  ;;  %v2793_v4 = vsel %vm2676_vm9, %v1945_v43, %v656_v22  ;;  %v2815_v43 = vld [vmem:[#allocation2 + $0x2c] sm:$0x1]  ;;  %v1407_v51 = vld [vmem:[#allocation2 + $0x38] sm:$0xf] }
  0x53   : > { %v1946_v40 = vrot.slane %v616_v56, 9  ;;  %v1428_v10 = vshrl.u32 %v1399_v37, 16  ;;  %v1951_v7 = vcombine.low %v2775_v47, %v2779_v58  ;;  %v660_v21 = vrot.slane %v2640_v15, 5 }
  0x54   : > { %v1416_v31 = vrot.slane %v1414_v57, 4  ;;  %v1419_v16 = vrot.slane %v1417_v9, 5  ;;  %v1947_v17 = vrot.slane %v2781_v63, 9  ;;  %v1423_v18 = vshll.u32 %v2783_v35, 16 }
  0x55   : > { %2094 = vmatmul.mubr.msk.bf16.vlgmr.msra.gmra.mrb[0].mxu1 %vm429_vm5, %v1934_v14  ;;  %v1430_v19 = vrot.slane %v1428_v10, 4  ;;  %v1431_v20 = vshll.u32 %v1399_v37, 16  ;;  %v1437_v15 = vshll.u32 %v2787_v62, 16  ;;  %v1442_v24 = vshrl.u32 %v1401_v2, 16 }
  0x56   : > { %2102 = vmatpush3.bf16.msra.mxu1 %v697_v28  ;;  %2097 = vmatprep.mubr.msk.bf16.mxu1 %vm429_vm5, %v1935_v59  ;;  %v1420_v23 = vor.u32 %v1419_v16, %v1416_v31  ;;  %v1445_v25 = vshll.u32 %v1401_v2, 16  ;;  %v664_v30 = vrot.slane %v2658_v41, 5  ;;  %v1456_v39 = vshrl.u32 %v1403_v26, 16  ;;  %v1405_v28 = vld [vmem:[#allocation2 + $0x30] sm:$0xf] }
  0x57   : > { %2138 = vmatmul.mubr.msk.bf16.gmra.mrb[4].mxu0 %vm429_vm5, %v1988_v60  ;;  %2240 = vmatprep.subr.msk.bf16.mxu1 %vm442_vm0, %v2729_v13  ;;  %v1433_v33 = vrot.slane %v1431_v20, 5  ;;  %v1459_v42 = vshll.u32 %v1403_v26, 16  ;;  %v1948_v29 = vrot.slane %v618_v27, 9  ;;  %v668_v36 = vrot.slane %v2663_v46, 5  ;;  %v2818_v46 = vld [vmem:[#allocation2 + $0x34] sm:$0x1] }
  0x58   : > { %2143 = vmatprep.mubr.msk.bf16.mxu0 %vm429_vm5, %v2304_v0  ;;  %v1444_v45 = vrot.slane %v1442_v24, 4  ;;  %v1447_v13 = vrot.slane %v1445_v25, 5  ;;  %v2813_v11 = vsel %vm2676_vm9, %v1946_v40, %v660_v21  ;;  %v1458_v41 = vrot.slane %v1456_v39, 4  ;;  %v2823_v59 = vld [vmem:[%s2995_s2 + $0x20] sm:$0xf] }
  0x59   : > { %v1434_v54 = vor.u32 %v1433_v33, %v1430_v19  ;;  %v1461_v22 = vrot.slane %v1459_v42, 5  ;;  %v1421_v14 = vrot.slane %v1420_v23, 4  ;;  %v1425_v6 = vrot.slane %v1423_v18, 5  ;;  %v2833_v40 = vld [vmem:[#allocation2 + $0x3c] sm:$0x1] }
  0x5a   : > { %v1439_v52 = vrot.slane %v1437_v15, 5  ;;  %v1451_v56 = vshll.u32 %v2808_v34, 16  ;;  %v1448_v0 = vor.u32 %v1447_v13, %v1444_v45  ;;  %v1470_v63 = vshrl.u32 %v1405_v28, 16  ;;  %v1409_v26 = vld [vmem:[#allocation2 + $0x40] sm:$0xf] }
  0x5b   : > { %v1435_v37 = vrot.slane %v1434_v54, 4  ;;  %v1473_v60 = vshll.u32 %v1405_v28, 16  ;;  %v1952_v57 = vcombine.low %v2793_v4, %v2813_v11  ;;  %v2830_v9 = vsel %vm2676_vm9, %v1947_v17, %v664_v30  ;;  %v1411_v4 = vld [vmem:[#allocation2 + $0x48] sm:$0xf]  ;;  %v2851_v30 = vld [vmem:[#allocation2 + $0x44] sm:$0x1] }
  0x5c   : > { %v1465_v2 = vshll.u32 %v2815_v43, 16  ;;  %v1484_v10 = vshrl.u32 %v1407_v51, 16  ;;  %v2838_v21 = vsel %vm2676_vm9, %v1948_v29, %v668_v36  ;;  %v1462_v31 = vor.u32 %v1461_v22, %v1458_v41  ;;  %v2307_v45 = vld [vmem:[#allocation2 + $0x40] ss:$8 sps:$4 sm:$0xff]  }
  0x5d   : > { %2098 = vmatmul.mubr.msk.bf16.gmra.mrb[4].mxu1 %vm429_vm5, %v1936_v61  ;;  %v1472_v61 = vrot.slane %v1470_v63, 4  ;;  %v1475_v16 = vrot.slane %v1473_v60, 5  ;;  %v1426_v27 = vsel %vm2586_vm6, %v1421_v14, %v1425_v6  ;;  %v1440_v17 = vsel %vm2586_vm6, %v1435_v37, %v1439_v52  ;;  %v1628_v60 = vld [vmem:[#allocation2 + $0x18] sm:$0xe] }
  0x5e   : > { %2103 = vmatprep.mubr.msk.bf16.mxu1 %vm429_vm5, %v1950_v32  ;;  %v1453_v18 = vrot.slane %v1451_v56, 5  ;;  %v1479_v32 = vshll.u32 %v2818_v46, 16  ;;  %v1449_v19 = vrot.slane %v1448_v0, 4  ;;  %v1486_v23 = vrot.slane %v1484_v10, 4  ;;  %v1627_v56 = vld [vmem:[#allocation2 + $0x10] sm:$0xe] }
  0x5f   : > { %2144 = vmatmul.mubr.msk.bf16.vlgmr.msra.gmra.mrb[0].mxu0 %vm429_vm5, %v2305_v44  ;;  %v1476_v20 = vor.u32 %v1475_v16, %v1472_v61  ;;  %v1487_v15 = vshll.u32 %v1407_v51, 16  ;;  %v1467_v24 = vrot.slane %v1465_v2, 5  ;;  %v1493_v25 = vshll.u32 %v2833_v40, 16 }
  0x60   : > { %2152 = vmatpush3.bf16.msra.mxu0 %v2747_v5  ;;  %2147 = vmatprep.mubr.msk.bf16.mxu0 %vm429_vm5, %v2306_v48  ;;  %v1498_v33 = vshrl.u32 %v1409_v26, 16  ;;  %v1501_v39 = vshll.u32 %v1409_v26, 16  ;;  %v2003_v42 = vcombine.low %v1426_v27, %v1440_v17  ;;  %v1463_v44 = vrot.slane %v1462_v31, 4  ;;  %v2853_v5 = vld [vmem:[#allocation2 + $0x4c] sm:$0x1] }
  0x61   : > { %2246 = vmatprep.subr.msk.bf16.mxu0 %vm442_vm0, %v2823_v59  ;;  %v1489_v29 = vrot.slane %v1487_v15, 5  ;;  %v1512_v36 = vshrl.u32 %v1411_v4, 16  ;;  %v1481_v13 = vrot.slane %v1479_v32, 5  ;;  %v1515_v11 = vshll.u32 %v1411_v4, 16 }
  0x62   : > { %v1500_v28 = vrot.slane %v1498_v33, 4  ;;  %v1503_v48 = vrot.slane %v1501_v39, 5  ;;  %v1477_v54 = vrot.slane %v1476_v20, 4  ;;  %v1507_v22 = vshll.u32 %v2851_v30, 16 }
  0x63   : > { %v1490_v41 = vor.u32 %v1489_v29, %v1486_v23  ;;  %v1514_v51 = vrot.slane %v1512_v36, 4  ;;  %v1495_v14 = vrot.slane %v1493_v25, 5  ;;  %v1517_v6 = vrot.slane %v1515_v11, 5  ;;  %v1629_v25 = vld [vmem:[#allocation2 + $0x20] sm:$0xe] }
  0x64   : > { %v1521_v52 = vshll.u32 %v2853_v5, 16  ;;  %v1953_v37 = vcombine.low %v2830_v9, %v2838_v21  ;;  %v1504_v63 = vor.u32 %v1503_v48, %v1500_v28  ;;  %v1454_v47 = vsel %vm2586_vm6, %v1449_v19, %v1453_v18  ;;  %v900_v21 = vld [vmem:[#allocation2 + $0x30] sm:$0xf]  ;;  %v1630_v36 = vld [vmem:[#allocation2 + $0x28] sm:$0xe] }
  0x65   : > { %2104 = vmatmul.mubr.msk.bf16.vlgmr.msra.gmra.mrb[0].mxu1 %vm429_vm5, %v1951_v7  ;;  %v1491_v0 = vrot.slane %v1490_v41, 4  ;;  %v1468_v58 = vsel %vm2586_vm6, %v1463_v44, %v1467_v24  ;;  %v898_v7 = vld [vmem:[#allocation2 + $0x28] sm:$0xf]  ;;  %v1509_v9 = vrot.slane %v1507_v22, 5  ;;  %v2011_v2 = vrot.slane %v1627_v56, 9 }
  0x66   : > { %2112 = vmatpush3.bf16.msra.mxu1 %v2751_v49  ;;  %2107 = vmatprep.mubr.msk.bf16.mxu1 %vm429_vm5, %v1952_v57  ;;  %v1518_v49 = vor.u32 %v1517_v6, %v1514_v51  ;;  %v1482_v57 = vsel %vm2586_vm6, %v1477_v54, %v1481_v13  ;;  %v1653_v10 = vrot.slane %v2783_v35, 5  ;;  %v1523_v61 = vrot.slane %v1521_v52, 5  ;;  %v902_v48 = vld [vmem:[#allocation2 + $0x38] sm:$0xf]  ;;  %v904_v11 = vld [vmem:[#allocation2 + $0x40] sm:$0xf] }
  0x67   : > { %2148 = vmatmul.mubr.msk.bf16.gmra.mrb[4].mxu0 %vm429_vm5, %v2307_v45  ;;  %2242 = vmatprep.subr.msk.bf16.mxu1 %vm442_vm0, %v2476_v1  ;;  %v1496_v31 = vsel %vm2586_vm6, %v1491_v0, %v1495_v14  ;;  %v2012_v16 = vrot.slane %v1628_v60, 9  ;;  %v1657_v26 = vrot.slane %v2787_v62, 5  ;;  %v2308_v1 = vld [vmem:[#allocation2 + $0x8] ss:$8 sps:$4 sm:$0xff]   ;;  %v1505_v4 = vrot.slane %v1504_v63, 4 }
  0x68   : > { %2153 = vmatprep.mubr.msk.bf16.mxu0 %vm429_vm5, %v2003_v42  ;;  %v1519_v27 = vrot.slane %v1518_v49, 4  ;;  %v963_v17 = vshrl.u32 %v898_v7, 16  ;;  %v966_v18 = vshll.u32 %v898_v7, 16  ;;  %v2004_v32 = vcombine.low %v1454_v47, %v1468_v58  ;;  %v2309_v54 = vld [vmem:[#allocation2 + $0x18] ss:$8 sps:$4 sm:$0xff]  }
  0x69   : > { %v977_v19 = vshrl.u32 %v900_v21, 16  ;;  %v980_v20 = vshll.u32 %v900_v21, 16  ;;  %v2005_v23 = vcombine.low %v1482_v57, %v1496_v31  ;;  %v1710_v35 = vsel %vm442_vm0, %v2823_v59, 0  ;;  %v1631_v56 = vld [vmem:[#allocation2 + $0x30] sm:$0xe] }
  0x6a   : > { %v965_v15 = vrot.slane %v963_v17, 4  ;;  %v968_v24 = vrot.slane %v966_v18, 5  ;;  %v1510_v62 = vsel %vm2586_vm6, %v1505_v4, %v1509_v9  ;;  %v1524_v42 = vsel %vm2586_vm6, %v1519_v27, %v1523_v61  ;;  %v1633_v4 = vld [vmem:[#allocation2 + $0x40] sm:$0xe]  ;;  %v1634_v27 = vld [vmem:[#allocation2 + $0x48] sm:$0xe] }
  0x6b   : > { %v979_v33 = vrot.slane %v977_v19, 4  ;;  %v982_v39 = vrot.slane %v980_v20, 5  ;;  %v1654_v44 = vsel %vm2676_vm9, %v2011_v2, %v1653_v10  ;;  %v1658_v29 = vsel %vm2676_vm9, %v2012_v16, %v1657_v26 }
  0x6c   : > { %v969_v59 = vor.u32 %v968_v24, %v965_v15  ;;  %v972_v45 = vshll.u32 %v2693_v38, 16  ;;  %v986_v28 = vshll.u32 %v2695_v50, 16  ;;  %v2013_v41 = vrot.slane %v1629_v25, 9  ;;  %v2310_v38 = vld [vmem:[#allocation2 + $0x28] ss:$8 sps:$4 sm:$0xff]  }
  0x6d   : > { %2108 = vmatmul.mubr.msk.bf16.gmra.mrb[4].mxu1 %vm429_vm5, %v1953_v37  ;;  %v983_v13 = vor.u32 %v982_v39, %v979_v33  ;;  %v1661_v22 = vrot.slane %v2808_v34, 5  ;;  %v2006_v51 = vcombine.low %v1510_v62, %v1524_v42  ;;  %v2020_v14 = vcombine.low %v1654_v44, %v1658_v29  ;;  %v1632_v37 = vld [vmem:[#allocation2 + $0x38] sm:$0xe] }
  0x6e   : > { %2113 = vmatprep.mubr.msk.bf16.mxu1 %vm429_vm5, %v2308_v1  ;;  %v2014_v6 = vrot.slane %v1630_v36, 9  ;;  %v1665_v52 = vrot.slane %v2815_v43, 5  ;;  %v991_v0 = vshrl.u32 %v902_v48, 16  ;;  %v994_v63 = vshll.u32 %v902_v48, 16  ;;  %v2311_v1 = vld [vmem:[#allocation2 + $0x38] ss:$8 sps:$4 sm:$0xff]  }
  0x6f   : > { %2154 = vmatmul.mubr.msk.bf16.vlgmr.msra.gmra.mrb[0].mxu0 %vm429_vm5, %v2004_v32  ;;  %v1005_v50 = vshrl.u32 %v904_v11, 16  ;;  %v1008_v60 = vshll.u32 %v904_v11, 16  ;;  %v970_v47 = vrot.slane %v969_v59, 4  ;;  %v974_v58 = vrot.slane %v972_v45, 5 }
  0x70   : > { %2162 = vmatpush3.bf16.msra.mxu0 %v1710_v35  ;;  %2157 = vmatprep.mubr.msk.bf16.mxu0 %vm429_vm5, %v2005_v23  ;;  %v984_v49 = vrot.slane %v983_v13, 4  ;;  %v988_v7 = vrot.slane %v986_v28, 5  ;;  %v2015_v57 = vrot.slane %v1631_v56, 9  ;;  %v1669_v9 = vrot.slane %v2818_v46, 5 }
  0x71   : > { %v2016_v34 = vrot.slane %v1632_v37, 9  ;;  %v1673_v2 = vrot.slane %v2833_v40, 5  ;;  %v993_v43 = vrot.slane %v991_v0, 4  ;;  %v996_v10 = vrot.slane %v994_v63, 5 }
  0x72   : > { %v1007_v21 = vrot.slane %v1005_v50, 4  ;;  %v1010_v31 = vrot.slane %v1008_v60, 5  ;;  %v1000_v61 = vshll.u32 %v2701_v55, 16  ;;  %v975_v46 = vsel %vm2586_vm6, %v970_v47, %v974_v58 }
  0x73   : > { %v989_v40 = vsel %vm2586_vm6, %v984_v49, %v988_v7  ;;  %v1666_v16 = vsel %vm2676_vm9, %v2014_v6, %v1665_v52  ;;  %v1670_v26 = vsel %vm2676_vm9, %v2015_v57, %v1669_v9  ;;  %v1674_v55 = vsel %vm2676_vm9, %v2016_v34, %v1673_v2 }
  0x74   : > { %v1014_v17 = vshll.u32 %v2721_v8, 16  ;;  %v1970_v18 = vcombine.low %v975_v46, %v989_v40  ;;  %v997_v32 = vor.u32 %v996_v10, %v993_v43  ;;  %v1011_v19 = vor.u32 %v1010_v31, %v1007_v21 }
  0x75   : > { %2114 = vmatmul.mubr.msk.bf16.vlgmr.msra.gmra.mrb[0].mxu1 %vm429_vm5, %v2309_v54  ;;  %v2022_v23 = vcombine.low %v1670_v26, %v1674_v55  ;;  %v2017_v15 = vrot.slane %v1633_v4, 9  ;;  %v1677_v24 = vrot.slane %v2851_v30, 5  ;;  %v2018_v35 = vrot.slane %v1634_v27, 9 }
  0x76   : > { %2172 = vmatpush3.bf16.msra.mxu1 %v2485_v3  ;;  %2117 = vmatprep.mubr.msk.bf16.mxu1 %vm429_vm5, %v2310_v38  ;;  %v1662_v3 = vsel %vm2676_vm9, %v2013_v41, %v1661_v22  ;;  %v1681_v25 = vrot.slane %v2853_v5, 5  ;;  %v1002_v33 = vrot.slane %v1000_v61, 5  ;;  %v1016_v39 = vrot.slane %v1014_v17, 5 }
  0x77   : > { %2158 = vmatmul.mubr.msk.bf16.gmra.mrb[4].mxu0 %vm429_vm5, %v2006_v51  ;;  %v2021_v20 = vcombine.low %v1662_v3, %v1666_v16  ;;  %v998_v62 = vrot.slane %v997_v32, 4  ;;  %v1012_v8 = vrot.slane %v1011_v19, 4  ;;  %v1678_v30 = vsel %vm2676_vm9, %v2017_v15, %v1677_v24 }
  0x78   : > { %2163 = vmatprep.mubr.msk.bf16.mxu0 %vm429_vm5, %v2020_v14  ;;  %v1682_v5 = vsel %vm2676_vm9, %v2018_v35, %v1681_v25 }
  0x79   : > { %v1003_v42 = vsel %vm2586_vm6, %v998_v62, %v1002_v33  ;;  %v1017_v44 = vsel %vm2586_vm6, %v1012_v8, %v1016_v39  ;;  %v2023_v29 = vcombine.low %v1678_v30, %v1682_v5 }
  0x7a   : > { %v1971_v36 = vcombine.low %v1003_v42, %v1017_v44 }
  0x7d   : > { %2118 = vmatmul.mubr.msk.bf16.gmra.mrb[4].mxu1 %vm429_vm5, %v2311_v1 }
  0x7e   : > { %2127 = vmatprep.mubr.msk.bf16.mxu1 %vm429_vm5, %v1970_v18 }
  0x7f   : > { %2164 = vmatmul.mubr.msk.bf16.vlgmr.msra.gmra.mrb[0].mxu0 %vm429_vm5, %v2021_v20 }
  0x80   : > { %2167 = vmatprep.mubr.msk.bf16.mxu0 %vm429_vm5, %v2022_v23 }
  0x87   : > { %2168 = vmatmul.mubr.msk.bf16.gmra.mrb[4].mxu0 %vm429_vm5, %v2023_v29 }
  0x89   : > { %2128 = vmatmul.mubr.msk.bf16.vlgmr.msra.gmra.mrb[4].mxu1 %vm429_vm5, %v1971_v36 }
 0x148   : > { %v2115_v59 = vpop.f32.mrb[0].mxu1 }
 0x149   : > { %v851_v45 = vpop.f32.mrb[1].mxu1 }
 0x14a   : > { %v2116_v13 = vpop.f32.mrb[2].mxu1 }
 0x14b   : > { %v854_v28 = vpop.f32.mrb[3].mxu1 }
 0x152   : > { %v2165_v12 = vpop.f32.mrb[0].mxu0 }
 0x153   : > { %v2173_v48 = vadd.f32 %v2165_v12, %v2115_v59  ;;  %v1746_v11 = vpop.f32.mrb[1].mxu0 }
 0x154   : > { %v2174_v54 = vadd.f32 %v1746_v11, %v851_v45  ;;  %v2166_v53 = vpop.f32.mrb[2].mxu0 }
 0x155   : > { %1787 = vst [vmem:[%s215_s11 + $0x10] sm:$0xff] %v2173_v48  ;;  %v2175_v41 = vadd.f32 %v2166_v53, %v2116_v13  ;;  %v1749_v22 = vpop.f32.mrb[3].mxu0 }
 0x156   : > { %1785 = vst [vmem:[%s215_s11] sm:$0xff] %v2174_v54  ;;  %v2176_v51 = vadd.f32 %v1749_v22, %v854_v28 }
 0x157   : > { %1788 = vst [vmem:[%s215_s11 + $0x18] sm:$0xff] %v2175_v41 }
 0x158   : > { %1786 = vst [vmem:[%s215_s11 + $0x8] sm:$0xff] %v2176_v51 }
 0x15a   : > { %v2169_v14 = vpop.f32.mrb[4].mxu0 }
 0x15b   : > { %v1762_v6 = vpop.f32.mrb[5].mxu0 }
 0x15c   : > { %v2129_v52 = vpop.f32.mrb[4].mxu1  ;;  %v2170_v56 = vpop.f32.mrb[6].mxu0 }
 0x15d   : > { %v2177_v37 = vadd.f32 %v2169_v14, %v2129_v52  ;;  %v1097_v38 = vpop.f32.mrb[5].mxu1  ;;  %v1765_v0 = vpop.f32.mrb[7].mxu0 }
 0x15e   : > { %v2178_v63 = vadd.f32 %v1762_v6, %v1097_v38  ;;  %v2130_v50 = vpop.f32.mrb[6].mxu1 }
 0x15f   : > { %1791 = vst [vmem:[%s215_s11 + $0x30] sm:$0xff] %v2177_v37  ;;  %v2179_v60 = vadd.f32 %v2170_v56, %v2130_v50  ;;  %v1100_v47 = vpop.f32.mrb[7].mxu1 }
 0x160   : > { %1789 = vst [vmem:[%s215_s11 + $0x20] sm:$0xff] %v2178_v63  ;;  %v2180_v58 = vadd.f32 %v1765_v0, %v1100_v47 }
 0x161   : > { %1792 = vst [vmem:[%s215_s11 + $0x38] sm:$0xff] %v2179_v60 }
 0x162   : > { %1790 = vst [vmem:[%s215_s11 + $0x28] sm:$0xff] %v2180_v58 }
 0x163   : > { %2325 = shalt.err (!%p2322_p5)
}
 0x164   : > { %s2326_s4 = scalar_lea.hbm %s2941_s26, 1024  ;;  %s2330_s7 = scalar_lea.hbm %s2996_s3, 2048 }
 0x165   : > { %p2327_p6 = scmp.ne.s32.totalorder %s2941_s26, %s2326_s4  ;;  %p2331_p10 = scmp.lt.u32.totalorder %s2941_s26, %s2996_s3 }
 0x166   : > { %p2332_p11 = scmp.lt.u32.totalorder %s2330_s7, %s2326_s4  ;;  %p2334_p13 = scmp.lt.u32.totalorder %s2326_s4, %s2941_s26 }
 0x167   : > { %p2328_p7 = pnand %p2327_p6, %p2455_p4 }
 0x168   : > { %p2333_p12 = por %p2332_p11, %p2331_p10 }
 0x169   : > { %p2329_p9 = pneg %p2328_p7 }
 0x16a   : > { %p2335_p0 = por %p2334_p13, %p2333_p12 }
 0x16c   : > { %p2336_p1 = pnand %p2335_p0, %p2329_p9 }
 0x16e   : > { %2339 = shalt.err (!%p2336_p1)
}
 0x16f   : > { %s2393_s10 = smov 128   ;;  %s2394_s11 = smov 8  }
 0x170   : > { %2247 = dma.vmem_to_hbm [thread:$0]  (%p2455_p4), %s2943_s19, 1024, %s2941_s26, %s2947_s15, %s2393_s10, %s2393_s10, %s2394_s11  }
 0x171 PF: > { %p2253_p2 = scmp.ge.s32.totalorder %s2390_s17, 2  ;;  %s1824_s18 = sand.u32 1, %s2370_s12  }
 0x172   : > { %s1825_s21 = scalar_lea.sflag [#allocation4], %s1824_s18 }
 0x173   : > { %p2250_p3 = pnand %p2253_p2, %p2462_p8 }
 0x175   : > { %2365 = dma.done.wait (!%p2250_p3), %s1825_s21, 1024  }
 0x176   : > { %2367 = vsyncadd (!%p2250_p3), %s1825_s21, 4294966272  ;;  %s16_s17 = sadd.s32 1, %s2390_s17   ;;  %s3003_s12 = smov %s2374_s13 }
 0x177   : > { %p13_p5 = scmp.ge.s32.totalorder %s16_s17, 4   ;;  %s3004_s13 = smov %s2378_s14 }
 0x178   : > { %s3005_s14 = smov %s2468_s25  ;;  %s3006_s15 = smov %s2386_s16 }
 0x179   : > { %s3007_s16 = smov %s3009_s20  ;;  %15 = sbr.rel (!%p13_p5) target bundleno = 4 (0x4), region = 82 }
 0x180   :  { %1830 = vsyncpa [#allocation4], 1 }
 0x181   :  { %1832 = vsyncpa [#allocation4 + $0x1], 1 }

</bundles_post_ra>
